<compile_context>
chip_gen: v7x
topology: tpu7x:2x2x1
jax: 0.10.0
libtpu: 0.0.40
codegen_flags: <defaults>
</compile_context>

<pallas_src>
import jax
import jax.numpy as jnp
from jax.experimental import pallas as pl
from jax.experimental.pallas import tpu as pltpu


def lora_kernel(x_ref, wa_ref, ba_ref, wd0_ref, bd0_ref, wd1_ref, bd1_ref,
                wb_ref, bb_ref, out_ref):
    # A: (tb, D_in) @ (D_in, r_p), f32 accumulate, sigmoid on the EUP.
    h = jnp.dot(x_ref[...], wa_ref[...],
                preferred_element_type=jnp.float32) + ba_ref[...]
    h = jax.nn.sigmoid(h)                                         # (tb, r_p)

    # DNN layer 0: r -> hidden, ReLU.
    h = jnp.dot(h.astype(wd0_ref.dtype), wd0_ref[...],
                preferred_element_type=jnp.float32) + bd0_ref[...]
    h = jnp.maximum(h, 0.0)                                       # (tb, h_p)

    # DNN layer 1: hidden -> r, ReLU.
    h = jnp.dot(h.astype(wd1_ref.dtype), wd1_ref[...],
                preferred_element_type=jnp.float32) + bd1_ref[...]
    h = jnp.maximum(h, 0.0)                                       # (tb, r_p)

    # B: r -> output_dim.  out_ref last dim is 128-multiple -> lane-dense store.
    y = jnp.dot(h.astype(wb_ref.dtype), wb_ref[...],
                preferred_element_type=jnp.float32) + bb_ref[...]
    out_ref[...] = y.astype(out_ref.dtype)                        # (tb, D_out_p)


def _round_up(n, m):
    return ((n + m - 1) // m) * m


def lora_forward(x, params, *, tile_b=256, compute_dtype=None):
    B, D_in = x.shape
    wa, ba = params["wa"], params["ba"]
    wd0, bd0 = params["wd0"], params["bd0"]
    wd1, bd1 = params["wd1"], params["bd1"]
    wb, bb = params["wb"], params["bb"]
    r, hidden, D_out = wa.shape[1], wd0.shape[1], wb.shape[1]

    LANE = 128
    # Internal / output feature dims padded to full MXU lane width.  D_in is NOT
    # padded: its blocks cover the full dim (always legal) and padding would
    # only inflate HBM reads of x.
    r_p = _round_up(max(r, LANE), LANE)
    h_p = _round_up(max(hidden, LANE), LANE)
    D_out_p = _round_up(max(D_out, LANE), LANE)

    # Batch tile: large (fills MXU M, amortizes per-step overhead) but never
    # larger than the 8-rounded batch.  Batch zero-padded to a tile multiple;
    # padded rows are sliced off afterwards.
    tile_b = min(tile_b, _round_up(B, 8))
    B_p = _round_up(B, tile_b)

    def pad2(a, rows, cols):
        return jnp.pad(a, ((0, rows - a.shape[0]), (0, cols - a.shape[1])))

    x_p = pad2(x, B_p, D_in)
    wa_p, ba_p = pad2(wa, D_in, r_p), pad2(ba, 1, r_p)
    wd0_p, bd0_p = pad2(wd0, r_p, h_p), pad2(bd0, 1, h_p)
    wd1_p, bd1_p = pad2(wd1, h_p, r_p), pad2(bd1, 1, r_p)
    wb_p, bb_p = pad2(wb, r_p, D_out_p), pad2(bb, 1, D_out_p)

    if compute_dtype is not None:
        # bf16 matmul operands (v6e/v7x): halves DMA bytes, doubles MXU rate;
        # accumulation stays f32 via preferred_element_type.  Biases stay f32.
        x_p = x_p.astype(compute_dtype)
        wa_p = wa_p.astype(compute_dtype)
        wd0_p = wd0_p.astype(compute_dtype)
        wd1_p = wd1_p.astype(compute_dtype)
        wb_p = wb_p.astype(compute_dtype)

    # Weights/biases are grid-invariant: full-extent blocks, fetched once and
    # resident in VMEM across all batch tiles.
    full = lambda arr: pl.BlockSpec(arr.shape, lambda i: (0,) * arr.ndim)

    out_p = pl.pallas_call(
        lora_kernel,
        out_shape=jax.ShapeDtypeStruct((B_p, D_out_p), x.dtype),
        grid=(B_p // tile_b,),
        in_specs=[
            pl.BlockSpec((tile_b, D_in), lambda i: (i, 0)),   # x: tiled over batch
            full(wa_p), full(ba_p),
            full(wd0_p), full(bd0_p),
            full(wd1_p), full(bd1_p),
            full(wb_p), full(bb_p),
        ],
        out_specs=pl.BlockSpec((tile_b, D_out_p), lambda i: (i, 0)),
        compiler_params=pltpu.CompilerParams(
            dimension_semantics=("parallel",)),
    )(x_p, wa_p, ba_p, wd0_p, bd0_p, wd1_p, bd1_p, wb_p, bb_p)

    return out_p[:B, :D_out]


def lora_ref(x, p):
    h = jax.nn.sigmoid(x @ p["wa"] + p["ba"])
    h = jnp.maximum(h @ p["wd0"] + p["bd0"], 0.0)
    h = jnp.maximum(h @ p["wd1"] + p["bd1"], 0.0)
    return h @ p["wb"] + p["bb"]


def make_params(key, input_dim, output_dim, r, hidden):
    ks = jax.random.split(key, 8)
    f32 = jnp.float32
    return {
        # A: normal(0, 0.01), bias 0 (matches torch init).
        "wa": 0.01 * jax.random.normal(ks[0], (input_dim, r), f32),
        "ba": jnp.zeros((1, r), f32),
        # DNN linears: torch init is normal(0, 1e-4); use a larger deterministic
        # std so the ReLU path is numerically non-trivial.
        "wd0": 0.05 * jax.random.normal(ks[1], (r, hidden), f32),
        "bd0": 0.05 * jax.random.normal(ks[2], (1, hidden), f32),
        "wd1": 0.05 * jax.random.normal(ks[3], (hidden, r), f32),
        "bd1": 0.05 * jax.random.normal(ks[4], (1, r), f32),
        # B: torch zero-inits (LoRA); small randoms for a meaningful check.
        "wb": 0.01 * jax.random.normal(ks[5], (r, output_dim), f32),
        "bb": 0.01 * jax.random.normal(ks[6], (1, output_dim), f32),
    }


if __name__ == "__main__":
    # Shapes consistent with the module: x is (batch, input_dim).  Batch is
    # kept small but large enough for a 2-step parallel grid with 128-row
    # tiles (both v7x TensorCores busy); feature dims stay small, with the
    # internal/output dims padded to 128 lanes inside the wrapper.
    batch, input_dim, output_dim, r = 256, 32, 32, 8
    dnn_hidden_states = [16]          # DNN hidden_units = [16] + [r]

    key = jax.random.PRNGKey(0)
    kx, kp = jax.random.split(key)
    x = jax.random.normal(kx, (batch, input_dim), jnp.float32)
    params = make_params(kp, input_dim, output_dim, r, dnn_hidden_states[0])

    out = lora_forward(x, params, tile_b=128)   # f32 compute for a tight check
    out = jax.block_until_ready(out)

    ref = lora_ref(x, params)
    assert out.shape == (batch, output_dim)
    assert jnp.allclose(out, ref, rtol=1e-4, atol=1e-5), (
        f"max abs err {jnp.max(jnp.abs(out - ref))}")

    print("KERNEL_OK")
</pallas_src>

<mosaic_0001>
module attributes {stable_mosaic.version = 11 : i64} {
  func.func @lora_kernel(%arg0: i32, %arg1: memref<128x32xf32, #tpu.memory_space<vmem>>, %arg2: memref<32x128xf32, #tpu.memory_space<vmem>>, %arg3: memref<1x128xf32, #tpu.memory_space<vmem>>, %arg4: memref<128x128xf32, #tpu.memory_space<vmem>>, %arg5: memref<1x128xf32, #tpu.memory_space<vmem>>, %arg6: memref<128x128xf32, #tpu.memory_space<vmem>>, %arg7: memref<1x128xf32, #tpu.memory_space<vmem>>, %arg8: memref<128x128xf32, #tpu.memory_space<vmem>>, %arg9: memref<1x128xf32, #tpu.memory_space<vmem>>, %arg10: memref<128x128xf32, #tpu.memory_space<vmem>>) attributes {dimension_semantics = [#tpu.dimension_semantics<parallel>], iteration_bounds = array<i64: 2>, scalar_prefetch = 0 : i64, scratch_operands = 0 : i64, tpu.core_type = #tpu.core_type<tc>, window_params = [{transform_indices = @transform_0, window_bounds = array<i64: 128, 32>}, {pipeline_mode = #tpu.pipeline_mode<synchronous>, transform_indices = @transform_1, window_bounds = array<i64: 32, 128>}, {pipeline_mode = #tpu.pipeline_mode<synchronous>, transform_indices = @transform_2, window_bounds = array<i64: 1, 128>}, {pipeline_mode = #tpu.pipeline_mode<synchronous>, transform_indices = @transform_3, window_bounds = array<i64: 128, 128>}, {pipeline_mode = #tpu.pipeline_mode<synchronous>, transform_indices = @transform_4, window_bounds = array<i64: 1, 128>}, {pipeline_mode = #tpu.pipeline_mode<synchronous>, transform_indices = @transform_5, window_bounds = array<i64: 128, 128>}, {pipeline_mode = #tpu.pipeline_mode<synchronous>, transform_indices = @transform_6, window_bounds = array<i64: 1, 128>}, {pipeline_mode = #tpu.pipeline_mode<synchronous>, transform_indices = @transform_7, window_bounds = array<i64: 128, 128>}, {pipeline_mode = #tpu.pipeline_mode<synchronous>, transform_indices = @transform_8, window_bounds = array<i64: 1, 128>}, {transform_indices = @transform_9, window_bounds = array<i64: 128, 128>}]} {
    %c0 = arith.constant 0 : index
    %c0_0 = arith.constant 0 : index
    %0 = vector.load %arg1[%c0, %c0_0] : memref<128x32xf32, #tpu.memory_space<vmem>>, vector<128x32xf32>
    %c0_1 = arith.constant 0 : index
    %c0_2 = arith.constant 0 : index
    %1 = vector.load %arg2[%c0_1, %c0_2] : memref<32x128xf32, #tpu.memory_space<vmem>>, vector<32x128xf32>
    %cst = arith.constant dense<0.000000e+00> : vector<128x128xf32>
    %2 = tpu.matmul %0, %1, %cst {dimension_numbers = #tpu.dot_dimension_numbers<[1], [0], [0], [1], [0, 0, 1, 1], [], []>} : vector<128x32xf32>, vector<32x128xf32>, vector<128x128xf32> -> vector<128x128xf32>
    %c0_3 = arith.constant 0 : index
    %c0_4 = arith.constant 0 : index
    %3 = vector.load %arg3[%c0_3, %c0_4] : memref<1x128xf32, #tpu.memory_space<vmem>>, vector<1x128xf32>
    %4 = vector.broadcast %3 : vector<1x128xf32> to vector<128x128xf32>
    %5 = arith.addf %2, %4 : vector<128x128xf32>
    %6 = arith.negf %5 : vector<128x128xf32>
    %7 = math.exp %6 : vector<128x128xf32>
    %cst_5 = arith.constant 1.000000e+00 : f32
    %8 = vector.broadcast %cst_5 : f32 to vector<128x128xf32>
    %9 = arith.addf %8, %7 : vector<128x128xf32>
    %10 = arith.divf %8, %9 : vector<128x128xf32>
    %c0_6 = arith.constant 0 : index
    %c0_7 = arith.constant 0 : index
    %11 = vector.load %arg4[%c0_6, %c0_7] : memref<128x128xf32, #tpu.memory_space<vmem>>, vector<128x128xf32>
    %cst_8 = arith.constant dense<0.000000e+00> : vector<128x128xf32>
    %12 = tpu.matmul %10, %11, %cst_8 {dimension_numbers = #tpu.dot_dimension_numbers<[1], [0], [0], [1], [0, 0, 1, 1], [], []>} : vector<128x128xf32>, vector<128x128xf32>, vector<128x128xf32> -> vector<128x128xf32>
    %c0_9 = arith.constant 0 : index
    %c0_10 = arith.constant 0 : index
    %13 = vector.load %arg5[%c0_9, %c0_10] : memref<1x128xf32, #tpu.memory_space<vmem>>, vector<1x128xf32>
    %14 = vector.broadcast %13 : vector<1x128xf32> to vector<128x128xf32>
    %15 = arith.addf %12, %14 : vector<128x128xf32>
    %cst_11 = arith.constant 0.000000e+00 : f32
    %16 = vector.broadcast %cst_11 : f32 to vector<128x128xf32>
    %17 = arith.maximumf %15, %16 : vector<128x128xf32>
    %c0_12 = arith.constant 0 : index
    %c0_13 = arith.constant 0 : index
    %18 = vector.load %arg6[%c0_12, %c0_13] : memref<128x128xf32, #tpu.memory_space<vmem>>, vector<128x128xf32>
    %cst_14 = arith.constant dense<0.000000e+00> : vector<128x128xf32>
    %19 = tpu.matmul %17, %18, %cst_14 {dimension_numbers = #tpu.dot_dimension_numbers<[1], [0], [0], [1], [0, 0, 1, 1], [], []>} : vector<128x128xf32>, vector<128x128xf32>, vector<128x128xf32> -> vector<128x128xf32>
    %c0_15 = arith.constant 0 : index
    %c0_16 = arith.constant 0 : index
    %20 = vector.load %arg7[%c0_15, %c0_16] : memref<1x128xf32, #tpu.memory_space<vmem>>, vector<1x128xf32>
    %21 = vector.broadcast %20 : vector<1x128xf32> to vector<128x128xf32>
    %22 = arith.addf %19, %21 : vector<128x128xf32>
    %cst_17 = arith.constant 0.000000e+00 : f32
    %23 = vector.broadcast %cst_17 : f32 to vector<128x128xf32>
    %24 = arith.maximumf %22, %23 : vector<128x128xf32>
    %c0_18 = arith.constant 0 : index
    %c0_19 = arith.constant 0 : index
    %25 = vector.load %arg8[%c0_18, %c0_19] : memref<128x128xf32, #tpu.memory_space<vmem>>, vector<128x128xf32>
    %cst_20 = arith.constant dense<0.000000e+00> : vector<128x128xf32>
    %26 = tpu.matmul %24, %25, %cst_20 {dimension_numbers = #tpu.dot_dimension_numbers<[1], [0], [0], [1], [0, 0, 1, 1], [], []>} : vector<128x128xf32>, vector<128x128xf32>, vector<128x128xf32> -> vector<128x128xf32>
    %c0_21 = arith.constant 0 : index
    %c0_22 = arith.constant 0 : index
    %27 = vector.load %arg9[%c0_21, %c0_22] : memref<1x128xf32, #tpu.memory_space<vmem>>, vector<1x128xf32>
    %28 = vector.broadcast %27 : vector<1x128xf32> to vector<128x128xf32>
    %29 = arith.addf %26, %28 : vector<128x128xf32>
    %c0_23 = arith.constant 0 : index
    %c0_24 = arith.constant 0 : index
    %30 = vector.load %arg10[%c0_23, %c0_24] : memref<128x128xf32, #tpu.memory_space<vmem>>, vector<128x128xf32>
    tpu.vector_store %arg10[%c0_23, %c0_24], %29 {strides = array<i32>} : memref<128x128xf32, #tpu.memory_space<vmem>>, vector<128x128xf32>,
    return
  }
  func.func @transform_0(%arg0: i32) -> (i32, i32) {
    %c0_i32 = arith.constant 0 : i32
    %c0_i32_0 = arith.constant 0 : i32
    return %arg0, %c0_i32 : i32, i32
  }
  func.func @transform_1(%arg0: i32) -> (i32, i32) {
    %c0_i32 = arith.constant 0 : i32
    %c0_i32_0 = arith.constant 0 : i32
    %c0_i32_1 = arith.constant 0 : i32
    return %c0_i32, %c0_i32_0 : i32, i32
  }
  func.func @transform_2(%arg0: i32) -> (i32, i32) {
    %c0_i32 = arith.constant 0 : i32
    %c0_i32_0 = arith.constant 0 : i32
    %c0_i32_1 = arith.constant 0 : i32
    return %c0_i32, %c0_i32_0 : i32, i32
  }
  func.func @transform_3(%arg0: i32) -> (i32, i32) {
    %c0_i32 = arith.constant 0 : i32
    %c0_i32_0 = arith.constant 0 : i32
    %c0_i32_1 = arith.constant 0 : i32
    return %c0_i32, %c0_i32_0 : i32, i32
  }
  func.func @transform_4(%arg0: i32) -> (i32, i32) {
    %c0_i32 = arith.constant 0 : i32
    %c0_i32_0 = arith.constant 0 : i32
    %c0_i32_1 = arith.constant 0 : i32
    return %c0_i32, %c0_i32_0 : i32, i32
  }
  func.func @transform_5(%arg0: i32) -> (i32, i32) {
    %c0_i32 = arith.constant 0 : i32
    %c0_i32_0 = arith.constant 0 : i32
    %c0_i32_1 = arith.constant 0 : i32
    return %c0_i32, %c0_i32_0 : i32, i32
  }
  func.func @transform_6(%arg0: i32) -> (i32, i32) {
    %c0_i32 = arith.constant 0 : i32
    %c0_i32_0 = arith.constant 0 : i32
    %c0_i32_1 = arith.constant 0 : i32
    return %c0_i32, %c0_i32_0 : i32, i32
  }
  func.func @transform_7(%arg0: i32) -> (i32, i32) {
    %c0_i32 = arith.constant 0 : i32
    %c0_i32_0 = arith.constant 0 : i32
    %c0_i32_1 = arith.constant 0 : i32
    return %c0_i32, %c0_i32_0 : i32, i32
  }
  func.func @transform_8(%arg0: i32) -> (i32, i32) {
    %c0_i32 = arith.constant 0 : i32
    %c0_i32_0 = arith.constant 0 : i32
    %c0_i32_1 = arith.constant 0 : i32
    return %c0_i32, %c0_i32_0 : i32, i32
  }
  func.func @transform_9(%arg0: i32) -> (i32, i32) {
    %c0_i32 = arith.constant 0 : i32
    %c0_i32_0 = arith.constant 0 : i32
    return %arg0, %c0_i32 : i32, i32
  }
}

</mosaic_0001>

<bundles_post_ra>
// kernel: tpu_custom_call.1
= control target key start
LH: loop header
LB: loop body
LE: loop exit
PB: predicated region body
PF: predicated region fallthrough
CT: control target
= control target key end

     0   :  { %14 = vsyncpa [#allocation3], 0  ;;  %s2431_s0 = inlined_call_operand.vmem [shape: f32[256,32], index: 0, kind: input, shape index: {}]   ;;  %s2432_s1 = inlined_call_operand.vmem [shape: f32[32,128], index: 1, kind: input, shape index: {}]   ;;  %s2433_s2 = inlined_call_operand.vmem [shape: f32[1,128], index: 2, kind: input, shape index: {}]   ;;  %s2434_s3 = inlined_call_operand.vmem [shape: f32[128,128], index: 3, kind: input, shape index: {}]   ;;  %s2435_s4 = inlined_call_operand.vmem [shape: f32[1,128], index: 4, kind: input, shape index: {}]   ;;  %s2436_s5 = inlined_call_operand.vmem [shape: f32[128,128], index: 5, kind: input, shape index: {}]   ;;  %s2437_s6 = inlined_call_operand.vmem [shape: f32[1,128], index: 6, kind: input, shape index: {}]   ;;  %s2438_s7 = inlined_call_operand.hbm [shape: f32[128,128], index: 7, kind: input, shape index: {}]   ;;  %s2439_s8 = inlined_call_operand.vmem [shape: f32[1,128], index: 8, kind: input, shape index: {}]   ;;  %s2440_s9 = inlined_call_operand.hbm [shape: f32[256,128], index: 9, kind: output, shape index: {}]  }
   0x1   :  { %15 = vsyncpa [#allocation4], 0 }
   0x2   :  { %17 = vsyncpa [#allocation4 + $0x1], 0  ;;  %s2063_s30 = smov 0   ;;  %s2065_s10 = smov 0  }
   0x3   :  { %s2067_s11 = smov 0   ;;  %s2069_s12 = smov 0  }
   0x4 LB: > { %s2084_s13 = sadd.s32 4294967295, %s2005_s12   ;;  %s1306_s14 = sadd.s32 4294967294, %s2005_s12   ;;  %s2005_s12 = sphi %s2069_s12, %s2456_s12   ;;  %s2001_s11 = sphi %s2067_s11, %s2455_s11   ;;  %s1997_s10 = sphi %s2065_s10, %s2454_s10   ;;  %s1993_s30 = sphi %s2063_s30, %s2453_s30  }
   0x5   : > { %s2088_s15 = sadd.s32 1, %s2005_s12   ;;  %s224_s16 = sadd.s32 1, %s2001_s11 }
   0x6   : > { %s221_s17 = ssub.s32 %s2005_s12, %s2088_s15  ;;  %p234_p0 = scmp.ne.s32.totalorder %s2001_s11, %s1997_s10 }
   0x7   : > { %p222_p1 = scmp.eq.s32.totalorder %s221_s17, 0  ;;  %p235_p2 = scmp.eq.s32.totalorder %s2084_s13, 1 }
   0x8   : > { %p240_p3 = scmp.ne.s32.totalorder %s1997_s10, %s1993_s30  ;;  %p241_p4 = scmp.eq.s32.totalorder %s1306_s14, 1 }
   0x9   : > { %s2099_s18 = scalar_select %p222_p1, %s2001_s11, %s224_s16  }
   0xa   : > { %p2101_p5 = por %p235_p2, %p234_p0  ;;  %p2105_p6 = por %p241_p4, %p240_p3 }
   0xb   : > { %p1307_p7 = scmp.ge.s32.totalorder %s2005_s12, 1  ;;  %p248_p8 = scmp.lt.s32.totalorder %s2005_s12, 3 }
   0xc   : > { %s2444_s19 = scalar_select %p2101_p5, 1, 0 }
   0xd   : > { %s2445_s20 = scalar_select %p2105_p6, 1, 0 }
   0xe   : > { %p2441_p9 = scmp.eq.s32.totalorder %s2084_s13, 0  ;;  %p2112_p10 = pnand %p1307_p7, %p248_p8 }
   0xf   : > { %s2007_s22 = smov [#allocation2]   ;;  %s1911_s27 = scalar_lea.hbm %s2438_s7, 2048 }
  0x10   : > { %s2446_s21 = scalar_select %p2112_p10, 1, 0 }
  0x11   : > { %s278_s23 = sshll.u32 %s2007_s22, 4  ;;  %p1799_p11 = pneg %p2112_p10  ;;  %s279_s23 = int_to_ptr.vmem [resolvable:$true] %s278_s23 }
  0x12   : > { %p1912_p13 = scmp.ne.s32.totalorder %s2438_s7, %s1911_s27  ;;  %p1918_p3 = scmp.lt.u32.totalorder %s1911_s27, %s2438_s7 }
  0x13   : > { %p2120_p12 = pnand %p2441_p9, %p1799_p11 }
  0x15   : > { %p1913_p0 = pneg %p2120_p12 }
  0x17   : > { %p1914_p1 = pnand %p1913_p0, %p1912_p13 }
  0x19   : > { %p1915_p2 = pneg %p1914_p1 }
  0x1b   : > { %p1920_p4 = pnand %p1918_p3, %p1915_p2 }
  0x1d   : > { %1923 = shalt.err (!%p1920_p4)
}
  0x1e   : > { %s1924_s17 = scalar_lea.vmem %s279_s23, 2048  ;;  %p1932_p9 = scmp.lt.s32.totalorder %s279_s23, %s279_s23 }
  0x1f   : > { %p1925_p7 = scmp.ne.s32.totalorder %s279_s23, %s1924_s17  ;;  %p1933_p6 = scmp.lt.s32.totalorder %s1924_s17, %s1924_s17 }
  0x21   : > { %p1927_p8 = pnand %p1925_p7, %p1913_p0  ;;  %p1934_p5 = por %p1933_p6, %p1932_p9 }
  0x23   : > { %p1928_p11 = pneg %p1927_p8 }
  0x25   : > { %p1935_p10 = pnand %p1934_p5, %p1928_p11 }
  0x27   : > { %1938 = shalt.err (!%p1935_p10)
}
  0x28   : > { %s2008_s22 = smov 128   ;;  %s2009_s25 = smov 8  }
  0x29   : > { %1802 = dma.hbm_to_vmem [thread:$0]  (!%p2120_p12), %s2438_s7, 2048, %s279_s23, [#allocation3], %s2008_s22, %s2008_s22, %s2009_s25  }
  0x2a   : > { %p2448_p13 = scmp.ne.s32.totalorder %s2446_s21, 0 }
  0x2b   : > { %p2449_p1 = scmp.eq.s32.totalorder (!%p2448_p13), %s2084_s13, 0 }
  0x2c   : > { %306 = sbr.rel (%p2448_p13) target bundleno = 1001 (0x3e9), region = 56 }
  0x33   : > { %1984 = dma.done.wait (%p2449_p1), [#allocation3], 2048   ;;  %p2450_p0 = pmov %p2449_p1 }
  0x34   : > { %s1313_s27 = sshll.u32 %s2084_s13, 4  ;;  %vm376_vm0 = vcmask 261120   ;;  %v365_v0 = vld [vmem:[%s2432_s1] sm:$0xff]  ;;  %v366_v1 = vld [vmem:[%s2432_s1 + $0x8] sm:$0xff]  ;;  %v367_v2 = vld [vmem:[%s2432_s1 + $0x10] sm:$0xff]  ;;  %s1356_s21 = sshll.u32 %s2084_s13, 11 }
  0x35   : > { %1986 = vsyncadd (%p2450_p0), [#allocation3], 4294965248  ;;  %p343_p5 = scmp.lt.s32.totalorder %s1313_s27, 31  ;;  %v1673_v3 = vpack.c.bf16 %v366_v1, %v365_v0  ;;  %v368_v4 = vld [vmem:[%s2432_s1 + $0x18] sm:$0xff]  ;;  %v666_v7 = vld [vmem:[%s2434_s3] sm:$0xff]  ;;  %s2382_s25 = scalar_lea.hbm %s2440_s9, %s1356_s21 }
  0x36   : > { %v1677_v6 = vpack.c.bf16 %v368_v4, %v367_v2  ;;  %v667_v8 = vld [vmem:[%s2434_s3 + $0x8] sm:$0xff]  ;;  %v668_v25 = vld [vmem:[%s2434_s3 + $0x10] sm:$0xff]  ;;  %v669_v26 = vld [vmem:[%s2434_s3 + $0x18] sm:$0xff]  ;;  %p2451_p9 = scmp.ne.s32.totalorder %s2444_s19, 0  ;;  %s2010_s28 = smov [#allocation5]  }
  0x37   : > { %s2458_s27 = smov (!%p343_p5, %s1313_s27), 31  ;;  %1674 = vmatprep.subr.bf16.mxu0 %v1673_v3  ;;  %v1681_v10 = vpack.c.bf16 %v667_v8, %v666_v7  ;;  %v1685_v27 = vpack.c.bf16 %v669_v26, %v668_v25  ;;  %v670_v28 = vld [vmem:[%s2434_s3 + $0x20] sm:$0xff]  ;;  %v671_v29 = vld [vmem:[%s2434_s3 + $0x28] sm:$0xff]  ;;  %v672_v31 = vld [vmem:[%s2434_s3 + $0x30] sm:$0xff] }
  0x38   : > { %s1314_s29 = sshll.u32 %s2458_s27, 3  ;;  %1676 = vmatpush3.bf16.msra.mxu0 %v1673_v3  ;;  %v1689_v30 = vpack.c.bf16 %v671_v29, %v670_v28  ;;  %v673_v32 = vld [vmem:[%s2434_s3 + $0x38] sm:$0xff]  ;;  %v674_v34 = vld [vmem:[%s2434_s3 + $0x40] sm:$0xff]  ;;  %v675_v35 = vld [vmem:[%s2434_s3 + $0x48] sm:$0xff]  ;;  %s339_s27 = sand.u32 1, %s1997_s10  }
  0x39   : > { %s2150_s16 = scalar_lea.vmem %s2431_s0, %s1314_s29  ;;  %1678 = vmatprep.subr.bf16.mxu0 %v1677_v6  ;;  %1682 = vmatprep.subr.bf16.mxu1 %v1681_v10  ;;  %v1693_v33 = vpack.c.bf16 %v673_v32, %v672_v31  ;;  %v1697_v36 = vpack.c.bf16 %v675_v35, %v674_v34  ;;  %v676_v37 = vld [vmem:[%s2434_s3 + $0x50] sm:$0xff]  ;;  %v677_v38 = vld [vmem:[%s2434_s3 + $0x58] sm:$0xff]  ;;  %v678_v40 = vld [vmem:[%s2434_s3 + $0x60] sm:$0xff]  ;;  %s1312_s29 = sshll.u32 %s339_s27, 7 }
  0x3a   : > { %v349_v5 = vld [vmem:[%s2150_s16] sm:$0xff]  ;;  %v350_v9 = vld [vmem:[%s2150_s16 + $0x8] sm:$0xff]  ;;  %v351_v11 = vld [vmem:[%s2150_s16 + $0x10] sm:$0xff]  ;;  %1684 = vmatpush3.bf16.msra.mxu1 %v1681_v10  ;;  %v1701_v39 = vpack.c.bf16 %v677_v38, %v676_v37  ;;  %s2361_s24 = scalar_lea.vmem [#allocation5], %s1312_s29  ;;  %s2390_s13 = scalar_lea.sflag [#allocation4], %s339_s27 }
  0x3b   : > { %1481 = vmatprep.mubr.msk.f32.mxu0 %vm376_vm0, %v349_v5  ;;  %v352_v12 = vld [vmem:[%s2150_s16 + $0x18] sm:$0xff]  ;;  %v353_v13 = vld [vmem:[%s2150_s16 + $0x20] sm:$0xff]  ;;  %v354_v14 = vld [vmem:[%s2150_s16 + $0x28] sm:$0xff]  ;;  %1686 = vmatprep.subr.bf16.mxu1 %v1685_v27  ;;  %s1232_s23 = sshll.u32 %s2361_s24, 4  ;;  %s1943_s29 = sshll.u32 %s2010_s28, 4  ;;  %s2384_s23 = int_to_ptr.vmem [resolvable:$true] %s1232_s23  ;;  %s1944_s29 = int_to_ptr.vmem [resolvable:$false] %s1943_s29 }
  0x3c   : > { %1680 = vmatpush3.bf16.msra.mxu0 %v1677_v6  ;;  %v355_v15 = vld [vmem:[%s2150_s16 + $0x30] sm:$0xff]  ;;  %v356_v16 = vld [vmem:[%s2150_s16 + $0x38] sm:$0xff]  ;;  %v357_v17 = vld [vmem:[%s2150_s16 + $0x40] sm:$0xff]  ;;  %s1939_s26 = scalar_lea.vmem %s2384_s23, 2048  ;;  %p1946_p2 = scmp.lt.s32.totalorder %s2384_s23, %s1944_s29 }
  0x3d   : > { %v358_v18 = vld [vmem:[%s2150_s16 + $0x48] sm:$0xff]  ;;  %v359_v19 = vld [vmem:[%s2150_s16 + $0x50] sm:$0xff]  ;;  %v360_v20 = vld [vmem:[%s2150_s16 + $0x58] sm:$0xff]  ;;  %p1940_p6 = scmp.ne.s32.totalorder %s2384_s23, %s1939_s26 }
  0x3e   : > { %v361_v21 = vld [vmem:[%s2150_s16 + $0x60] sm:$0xff]  ;;  %v362_v22 = vld [vmem:[%s2150_s16 + $0x68] sm:$0xff]  ;;  %v363_v23 = vld [vmem:[%s2150_s16 + $0x70] sm:$0xff]  ;;  %1688 = vmatpush3.bf16.msra.mxu1 %v1685_v27 }
  0x3f   : > { %1482 = vmatmul.mubr.msk.f32.vlgmr.msra.gmra.mrb[0].mxu0 %vm376_vm0, %v350_v9  ;;  %v364_v24 = vld [vmem:[%s2150_s16 + $0x78] sm:$0xff]  ;;  %1690 = vmatprep.subr.bf16.mxu1 %v1689_v30  ;;  %v679_v41 = vld [vmem:[%s2434_s3 + $0x68] sm:$0xff]  ;;  %v680_v43 = vld [vmem:[%s2434_s3 + $0x70] sm:$0xff]  ;;  %p1941_p10 = pnand %p1940_p6, %p2451_p9  ;;  %s1945_s16 = scalar_lea.vmem %s1944_s29, 4096 }
  0x40   : > { %1484 = vmatprep.mubr.msk.f32.mxu0 %vm376_vm0, %v351_v11  ;;  %v1705_v42 = vpack.c.bf16 %v679_v41, %v678_v40  ;;  %v681_v44 = vld [vmem:[%s2434_s3 + $0x78] sm:$0xff]  ;;  %v850_v46 = vld [vmem:[%s2436_s5] sm:$0xff]  ;;  %v851_v47 = vld [vmem:[%s2436_s5 + $0x8] sm:$0xff]  ;;  %p1947_p3 = scmp.lt.s32.totalorder %s1945_s16, %s1939_s26 }
  0x41   : > { %v1709_v45 = vpack.c.bf16 %v681_v44, %v680_v43  ;;  %v852_v48 = vld [vmem:[%s2436_s5 + $0x10] sm:$0xff]  ;;  %v1713_v49 = vpack.c.bf16 %v851_v47, %v850_v46  ;;  %v853_v50 = vld [vmem:[%s2436_s5 + $0x18] sm:$0xff]  ;;  %v854_v52 = vld [vmem:[%s2436_s5 + $0x20] sm:$0xff]  ;;  %p1942_p12 = pneg %p1941_p10 }
  0x42   : > { %1692 = vmatpush3.bf16.msra.mxu1 %v1689_v30  ;;  %v1717_v51 = vpack.c.bf16 %v853_v50, %v852_v48  ;;  %v855_v53 = vld [vmem:[%s2436_s5 + $0x28] sm:$0xff]  ;;  %v856_v55 = vld [vmem:[%s2436_s5 + $0x30] sm:$0xff]  ;;  %v857_v56 = vld [vmem:[%s2436_s5 + $0x38] sm:$0xff]  ;;  %p1948_p4 = por %p1947_p3, %p1946_p2 }
  0x43   : > { %1485 = vmatmul.mubr.msk.f32.gmra.mrb[2].mxu0 %vm376_vm0, %v352_v12  ;;  %1694 = vmatprep.subr.bf16.mxu1 %v1693_v33  ;;  %v1721_v54 = vpack.c.bf16 %v855_v53, %v854_v52  ;;  %v1725_v57 = vpack.c.bf16 %v857_v56, %v856_v55  ;;  %v858_v58 = vld [vmem:[%s2436_s5 + $0x40] sm:$0xff]  ;;  %v859_v59 = vld [vmem:[%s2436_s5 + $0x48] sm:$0xff]  ;;  %v860_v61 = vld [vmem:[%s2436_s5 + $0x50] sm:$0xff] }
  0x44   : > { %1487 = vmatprep.mubr.msk.f32.mxu0 %vm376_vm0, %v353_v13  ;;  %1714 = vmatprep.subr.bf16.mxu0 %v1713_v49  ;;  %v1729_v60 = vpack.c.bf16 %v859_v59, %v858_v58  ;;  %v861_v62 = vld [vmem:[%s2436_s5 + $0x58] sm:$0xff]  ;;  %v862_v0 = vld [vmem:[%s2436_s5 + $0x60] sm:$0xff]  ;;  %v863_v1 = vld [vmem:[%s2436_s5 + $0x68] sm:$0xff]  ;;  %p1949_p7 = pnand %p1948_p4, %p1942_p12 }
  0x45   : > { %1716 = vmatpush3.bf16.msra.mxu0 %v1713_v49  ;;  %v1733_v63 = vpack.c.bf16 %v861_v62, %v860_v61  ;;  %v1737_v2 = vpack.c.bf16 %v863_v1, %v862_v0  ;;  %v2289_v3 = vld [vmem:[%s2433_s2] ss:$0 sm:$0xff] }
  0x46   : > { %1696 = vmatpush3.bf16.msra.mxu1 %v1693_v33  ;;  %1718 = vmatprep.subr.bf16.mxu0 %v1717_v51 }
  0x47   : > { %1488 = vmatmul.mubr.msk.f32.gmra.mrb[4].mxu0 %vm376_vm0, %v354_v14  ;;  %1698 = vmatprep.subr.bf16.mxu1 %v1697_v36 }
  0x48   : > { %1490 = vmatprep.mubr.msk.f32.mxu0 %vm376_vm0, %v355_v15 }
  0x49   : > { %1720 = vmatpush3.bf16.msra.mxu0 %v1717_v51 }
  0x4a   : > { %1700 = vmatpush3.bf16.msra.mxu1 %v1697_v36  ;;  %1722 = vmatprep.subr.bf16.mxu0 %v1721_v54 }
  0x4b   : > { %1491 = vmatmul.mubr.msk.f32.gmra.mrb[6].mxu0 %vm376_vm0, %v356_v16  ;;  %1702 = vmatprep.subr.bf16.mxu1 %v1701_v39 }
  0x4c   : > { %1493 = vmatprep.mubr.msk.f32.mxu0 %vm376_vm0, %v357_v17 }
  0x4d   : > { %1724 = vmatpush3.bf16.msra.mxu0 %v1721_v54 }
  0x4e   : > { %1704 = vmatpush3.bf16.msra.mxu1 %v1701_v39  ;;  %1726 = vmatprep.subr.bf16.mxu0 %v1725_v57 }
  0x4f   : > { %1494 = vmatmul.mubr.msk.f32.gmra.mrb[8].mxu0 %vm376_vm0, %v358_v18  ;;  %1706 = vmatprep.subr.bf16.mxu1 %v1705_v42 }
  0x50   : > { %1496 = vmatprep.mubr.msk.f32.mxu0 %vm376_vm0, %v359_v19 }
  0x51   : > { %1728 = vmatpush3.bf16.msra.mxu0 %v1725_v57 }
  0x52   : > { %1708 = vmatpush3.bf16.msra.mxu1 %v1705_v42  ;;  %1730 = vmatprep.subr.bf16.mxu0 %v1729_v60 }
  0x53   : > { %1497 = vmatmul.mubr.msk.f32.gmra.mrb[10].mxu0 %vm376_vm0, %v360_v20  ;;  %1710 = vmatprep.subr.bf16.mxu1 %v1709_v45 }
  0x54   : > { %1499 = vmatprep.mubr.msk.f32.mxu0 %vm376_vm0, %v361_v21 }
  0x55   : > { %1732 = vmatpush3.bf16.msra.mxu0 %v1729_v60 }
  0x56   : > { %1712 = vmatpush3.bf16.msra.mxu1 %v1709_v45  ;;  %1734 = vmatprep.subr.bf16.mxu0 %v1733_v63 }
  0x57   : > { %1500 = vmatmul.mubr.msk.f32.gmra.mrb[12].mxu0 %vm376_vm0, %v362_v22 }
  0x58   : > { %1502 = vmatprep.mubr.msk.f32.mxu0 %vm376_vm0, %v363_v23 }
  0x59   : > { %1736 = vmatpush3.bf16.msra.mxu0 %v1733_v63 }
  0x5a   : > { %1738 = vmatprep.subr.bf16.mxu0 %v1737_v2 }
  0x5b   : > { %1503 = vmatmul.mubr.msk.f32.gmra.mrb[14].mxu0 %vm376_vm0, %v364_v24 }
  0x5d   : > { %1740 = vmatpush3.bf16.msra.mxu0 %v1737_v2 }
 0x112   : > { %v1483_v4 = vpop.f32.mrb[0].mxu0 }
 0x113   : > { %v497_v5 = vadd.f32 %v1483_v4, %v2289_v3  ;;  %v491_v6 = vpop.f32.mrb[1].mxu0 }
 0x114   : > { %v492_v7 = vadd.f32 %v2289_v3, %v491_v6 }
 0x115   : > { %v1333_v8 = vmul.f32 -1.442695, %v497_v5 }
 0x116   : > { %v1332_v9 = vmul.f32 -1.442695, %v492_v7  ;;  %v1486_v10 = vpop.f32.mrb[2].mxu0 }
 0x117   : > { %1847 = vpow2.f32 %v1333_v8  ;;  %v507_v11 = vadd.f32 %v1486_v10, %v2289_v3  ;;  %v501_v12 = vpop.f32.mrb[3].mxu0 }
 0x118   : > { %1849 = vpow2.f32 %v1332_v9  ;;  %v502_v13 = vadd.f32 %v2289_v3, %v501_v12 }
 0x119   : > { %v1335_v14 = vmul.f32 -1.442695, %v507_v11 }
 0x11a   : > { %v1334_v15 = vmul.f32 -1.442695, %v502_v13  ;;  %v1489_v16 = vpop.f32.mrb[4].mxu0 }
 0x11b   : > { %1851 = vpow2.f32 %v1335_v14  ;;  %v517_v17 = vadd.f32 %v1489_v16, %v2289_v3  ;;  %v511_v18 = vpop.f32.mrb[5].mxu0 }
 0x11c   : > { %1853 = vpow2.f32 %v1334_v15  ;;  %v512_v19 = vadd.f32 %v2289_v3, %v511_v18 }
 0x11d   : > { %v1337_v20 = vmul.f32 -1.442695, %v517_v17 }
 0x11e   : > { %v1336_v21 = vmul.f32 -1.442695, %v512_v19  ;;  %v1492_v22 = vpop.f32.mrb[6].mxu0 }
 0x11f   : > { %1855 = vpow2.f32 %v1337_v20  ;;  %v527_v23 = vadd.f32 %v1492_v22, %v2289_v3  ;;  %v521_v24 = vpop.f32.mrb[7].mxu0 }
 0x120   : > { %1857 = vpow2.f32 %v1336_v21  ;;  %v522_v25 = vadd.f32 %v2289_v3, %v521_v24 }
 0x121   : > { %v1848_v26 = vpop.eup %1847  ;;  %v1339_v27 = vmul.f32 -1.442695, %v527_v23 }
 0x122   : > { %v1850_v28 = vpop.eup %1849  ;;  %v619_v29 = vadd.f32 1.0, %v1848_v26  ;;  %v1338_v30 = vmul.f32 -1.442695, %v522_v25  ;;  %v1495_v31 = vpop.f32.mrb[8].mxu0 }
 0x123   : > { %1859 = vpow2.f32 %v1339_v27  ;;  %v537_v32 = vadd.f32 %v1495_v31, %v2289_v3  ;;  %v531_v33 = vpop.f32.mrb[9].mxu0  ;;  %v618_v34 = vadd.f32 1.0, %v1850_v28 }
 0x124   : > { %1861 = vrcp.f32 %v619_v29  ;;  %v532_v35 = vadd.f32 %v2289_v3, %v531_v33 }
 0x125   : > { %v1852_v36 = vpop.eup %1851  ;;  %1863 = vpow2.f32 %v1338_v30  ;;  %v1341_v37 = vmul.f32 -1.442695, %v537_v32 }
 0x126   : > { %v1854_v38 = vpop.eup %1853  ;;  %v621_v39 = vadd.f32 1.0, %v1852_v36  ;;  %v1340_v40 = vmul.f32 -1.442695, %v532_v35  ;;  %v1498_v41 = vpop.f32.mrb[10].mxu0  ;;  %1865 = vrcp.f32 %v618_v34  ;;  %v864_v36 = vld [vmem:[%s2436_s5 + $0x70] sm:$0xff] }
 0x127   : > { %v620_v42 = vadd.f32 1.0, %v1854_v38  ;;  %1867 = vpow2.f32 %v1341_v37  ;;  %v547_v43 = vadd.f32 %v1498_v41, %v2289_v3  ;;  %v541_v44 = vpop.f32.mrb[11].mxu0  ;;  %v865_v37 = vld [vmem:[%s2436_s5 + $0x78] sm:$0xff]  ;;  %v1036_v41 = vld [vmem:[#allocation2 + $0x10] sm:$0xff] }
 0x128   : > { %1869 = vrcp.f32 %v621_v39  ;;  %v542_v45 = vadd.f32 %v2289_v3, %v541_v44  ;;  %v1741_v38 = vpack.c.bf16 %v865_v37, %v864_v36  ;;  %v1034_v39 = vld [vmem:[#allocation2] sm:$0xff] }
 0x129   : > { %v1856_v46 = vpop.eup %1855  ;;  %1871 = vrcp.f32 %v620_v42  ;;  %v1343_v47 = vmul.f32 -1.442695, %v547_v43  ;;  %v1037_v43 = vld [vmem:[#allocation2 + $0x18] sm:$0xff] }
 0x12a   : > { %v1858_v48 = vpop.eup %1857  ;;  %v623_v49 = vadd.f32 1.0, %v1856_v46  ;;  %1873 = vpow2.f32 %v1340_v40  ;;  %v1342_v50 = vmul.f32 -1.442695, %v542_v45  ;;  %v1501_v51 = vpop.f32.mrb[12].mxu0  ;;  %1742 = vmatprep.subr.bf16.mxu0 %v1741_v38  ;;  %v1035_v40 = vld [vmem:[#allocation2 + $0x8] sm:$0xff]  ;;  %v1749_v44 = vpack.c.bf16 %v1037_v43, %v1036_v41  ;;  %v1038_v45 = vld [vmem:[#allocation2 + $0x20] sm:$0xff] }
 0x12b   : > { %v622_v52 = vadd.f32 1.0, %v1858_v48  ;;  %1875 = vpow2.f32 %v1343_v47  ;;  %v557_v53 = vadd.f32 %v1501_v51, %v2289_v3  ;;  %v551_v54 = vpop.f32.mrb[13].mxu0  ;;  %1744 = vmatpush3.bf16.msra.mxu0 %v1741_v38  ;;  %v1745_v42 = vpack.c.bf16 %v1035_v40, %v1034_v39  ;;  %v1039_v46 = vld [vmem:[#allocation2 + $0x28] sm:$0xff]  ;;  %v1040_v48 = vld [vmem:[#allocation2 + $0x30] sm:$0xff]  ;;  %v1042_v51 = vld [vmem:[#allocation2 + $0x40] sm:$0xff] }
 0x12c   : > { %1877 = vrcp.f32 %v623_v49  ;;  %v552_v55 = vadd.f32 %v2289_v3, %v551_v54  ;;  %v1753_v47 = vpack.c.bf16 %v1039_v46, %v1038_v45  ;;  %v1041_v49 = vld [vmem:[#allocation2 + $0x38] sm:$0xff]  ;;  %v1044_v54 = vld [vmem:[#allocation2 + $0x50] sm:$0xff] }
 0x12d   : > { %v1860_v56 = vpop.eup %1859  ;;  %1879 = vrcp.f32 %v622_v52  ;;  %v1345_v57 = vmul.f32 -1.442695, %v557_v53  ;;  %1746 = vmatprep.subr.bf16.mxu0 %v1745_v42  ;;  %1777 = vmatprep.subr.bf16.mxu1 %v1745_v42  ;;  %v1043_v52 = vld [vmem:[#allocation2 + $0x48] sm:$0xff]  ;;  %v1048_v45 = vld [vmem:[#allocation2 + $0x70] sm:$0xff]  ;;  %v1049_v46 = vld [vmem:[#allocation2 + $0x78] sm:$0xff] }
 0x12e   : > { %v1862_v58 = vpop.eup %1861  ;;  %v625_v59 = vadd.f32 1.0, %v1860_v56  ;;  %1881 = vpow2.f32 %v1342_v50  ;;  %v1344_v60 = vmul.f32 -1.442695, %v552_v55  ;;  %v1504_v61 = vpop.f32.mrb[14].mxu0  ;;  %v1757_v50 = vpack.c.bf16 %v1041_v49, %v1040_v48  ;;  %v1045_v55 = vld [vmem:[#allocation2 + $0x58] sm:$0xff] }
 0x12f   : > { %v1864_v62 = vpop.eup %1863  ;;  %1883 = vpow2.f32 %v1345_v57  ;;  %v567_v63 = vadd.f32 %v1504_v61, %v2289_v3  ;;  %v561_v0 = vpop.f32.mrb[15].mxu0  ;;  %v2313_v53 = vpack.c.bf16 %v1043_v52, %v1042_v51  ;;  %v2316_v56 = vpack.c.bf16 %v1045_v55, %v1044_v54  ;;  %v1046_v57 = vld [vmem:[#allocation2 + $0x60] sm:$0xff] }
 0x130   : > { %v1866_v1 = vpop.eup %1865  ;;  %1885 = vrcp.f32 %v625_v59  ;;  %v624_v2 = vadd.f32 1.0, %v1864_v62  ;;  %v562_v4 = vadd.f32 %v2289_v3, %v561_v0  ;;  %v1349_v48 = vld [vmem:[%s2437_s6] ss:$0 sm:$0xff] }
 0x131   : > { %v1868_v5 = vpop.eup %1867  ;;  %1887 = vpow2.f32 %v1344_v60  ;;  %v1347_v6 = vmul.f32 -1.442695, %v567_v63  ;;  %1537 = vmatprep.mubr.f32.mxu1 %v1866_v1  ;;  %v2328_v60 = vld [vmem:[%s2435_s4] ss:$0 sm:$0xff] }
 0x132   : > { %v1870_v7 = vpop.eup %1869  ;;  %1889 = vrcp.f32 %v624_v2  ;;  %v1346_v8 = vmul.f32 -1.442695, %v562_v4  ;;  %1538 = vmatmul.mubr.f32.vlgmr.msra.gmra.mrb[0].mxu1 %v1862_v58  ;;  %v627_v11 = vadd.f32 1.0, %v1868_v5  ;;  %v1047_v58 = vld [vmem:[#allocation2 + $0x68] sm:$0xff] }
 0x133   : > { %v1872_v9 = vpop.eup %1871  ;;  %1891 = vpow2.f32 %v1347_v6  ;;  %1785 = vmatpush3.bf16.msra.mxu1 %v1745_v42  ;;  %v2320_v59 = vpack.c.bf16 %v1047_v58, %v1046_v57 }
 0x134   : > { %v1874_v10 = vpop.eup %1873  ;;  %1540 = vmatprep.mubr.f32.mxu1 %v1872_v9  ;;  %1893 = vpow2.f32 %v1346_v8  ;;  %1778 = vmatprep.subr.bf16.mxu1 %v1749_v44 }
 0x135   : > { %v1876_v12 = vpop.eup %1875  ;;  %v626_v13 = vadd.f32 1.0, %v1874_v10 }
 0x136   : > { %v1878_v14 = vpop.eup %1877  ;;  %1541 = vmatmul.mubr.f32.gmra.mrb[2].mxu1 %v1870_v7  ;;  %v629_v16 = vadd.f32 1.0, %v1876_v12 }
 0x137   : > { %v1880_v15 = vpop.eup %1879  ;;  %1895 = vrcp.f32 %v626_v13  ;;  %1786 = vmatpush3.bf16.msra.mxu1 %v1749_v44 }
 0x138   : > { %v1882_v3 = vpop.eup %1881  ;;  %1897 = vrcp.f32 %v627_v11  ;;  %1543 = vmatprep.mubr.f32.mxu1 %v1880_v15  ;;  %1779 = vmatprep.subr.bf16.mxu1 %v1753_v47 }
 0x139   : > { %v1884_v17 = vpop.eup %1883  ;;  %v628_v18 = vadd.f32 1.0, %v1882_v3 }
 0x13a   : > { %v1886_v19 = vpop.eup %1885  ;;  %1544 = vmatmul.mubr.f32.gmra.mrb[4].mxu1 %v1878_v14  ;;  %v631_v22 = vadd.f32 1.0, %v1884_v17 }
 0x13b   : > { %v1888_v20 = vpop.eup %1887  ;;  %1899 = vrcp.f32 %v628_v18  ;;  %1787 = vmatpush3.bf16.msra.mxu1 %v1753_v47 }
 0x13c   : > { %v1890_v21 = vpop.eup %1889  ;;  %1901 = vrcp.f32 %v629_v16  ;;  %v630_v23 = vadd.f32 1.0, %v1888_v20  ;;  %1780 = vmatprep.subr.bf16.mxu1 %v1757_v50 }
 0x13d   : > { %v1892_v24 = vpop.eup %1891  ;;  %1546 = vmatprep.mubr.f32.mxu1 %v1890_v21 }
 0x13e   : > { %1903 = vrcp.f32 %v630_v23  ;;  %1547 = vmatmul.mubr.f32.gmra.mrb[6].mxu1 %v1886_v19  ;;  %v1894_v25 = vpop.eup %1893  ;;  %v633_v26 = vadd.f32 1.0, %v1892_v24 }
 0x13f   : > { %1905 = vrcp.f32 %v631_v22  ;;  %v632_v27 = vadd.f32 1.0, %v1894_v25  ;;  %1788 = vmatpush3.bf16.msra.mxu1 %v1757_v50 }
 0x140   : > { %1781 = vmatprep.subr.bf16.mxu1 %v2313_v53 }
 0x141   : > { %v1896_v28 = vpop.eup %1895  ;;  %1907 = vrcp.f32 %v632_v27 }
 0x142   : > { %v1898_v29 = vpop.eup %1897  ;;  %1549 = vmatprep.mubr.f32.mxu1 %v1896_v28  ;;  %1909 = vrcp.f32 %v633_v26 }
 0x143   : > { %1550 = vmatmul.mubr.f32.gmra.mrb[8].mxu1 %v1898_v29 }
 0x144   : > { %1789 = vmatpush3.bf16.msra.mxu1 %v2313_v53 }
 0x145   : > { %v1900_v30 = vpop.eup %1899  ;;  %1782 = vmatprep.subr.bf16.mxu1 %v2316_v56 }
 0x146   : > { %v1902_v31 = vpop.eup %1901  ;;  %1552 = vmatprep.mubr.f32.mxu1 %v1900_v30 }
 0x147   : > { %1553 = vmatmul.mubr.f32.gmra.mrb[10].mxu1 %v1902_v31 }
 0x148   : > { %v1904_v32 = vpop.eup %1903  ;;  %1790 = vmatpush3.bf16.msra.mxu1 %v2316_v56 }
 0x149   : > { %1555 = vmatprep.mubr.f32.mxu1 %v1904_v32  ;;  %v1906_v33 = vpop.eup %1905  ;;  %1783 = vmatprep.subr.bf16.mxu1 %v2320_v59 }
 0x14b   : > { %1556 = vmatmul.mubr.f32.gmra.mrb[12].mxu1 %v1906_v33  ;;  %v1908_v34 = vpop.eup %1907 }
 0x14c   : > { %1558 = vmatprep.mubr.f32.mxu1 %v1908_v34  ;;  %v1910_v35 = vpop.eup %1909  ;;  %1791 = vmatpush3.bf16.msra.mxu1 %v2320_v59 }
 0x14f   : > { %1559 = vmatmul.mubr.f32.gmra.mrb[14].mxu1 %v1910_v35 }
 0x205   : > { %v1539_v61 = vpop.f32.mrb[0].mxu1 }
 0x206   : > { %v761_v62 = vadd.f32 %v1539_v61, %v2328_v60  ;;  %v755_v63 = vpop.f32.mrb[1].mxu1 }
 0x207   : > { %v756_v0 = vadd.f32 %v2328_v60, %v755_v63 }
 0x208   : > { %v835_v4 = vmax.f32 %v761_v62, 0.0 }
 0x209   : > { %v834_v1 = vmax.f32 %v756_v0, 0.0  ;;  %v1542_v2 = vpop.f32.mrb[2].mxu1 }
 0x20a   : > { %v771_v5 = vadd.f32 %v1542_v2, %v2328_v60  ;;  %v765_v6 = vpop.f32.mrb[3].mxu1 }
 0x20b   : > { %v766_v7 = vadd.f32 %v2328_v60, %v765_v6  ;;  %1593 = vmatprep.mubr.f32.mxu0 %v834_v1 }
 0x20c   : > { %1594 = vmatmul.mubr.f32.vlgmr.msra.gmra.mrb[16].mxu0 %v835_v4  ;;  %v837_v10 = vmax.f32 %v771_v5, 0.0 }
 0x20d   : > { %v836_v8 = vmax.f32 %v766_v7, 0.0  ;;  %v1545_v9 = vpop.f32.mrb[4].mxu1  ;;  %1748 = vmatpush3.bf16.msra.mxu0 %v1745_v42 }
 0x20e   : > { %v781_v11 = vadd.f32 %v1545_v9, %v2328_v60  ;;  %v775_v12 = vpop.f32.mrb[5].mxu1  ;;  %1750 = vmatprep.subr.bf16.mxu0 %v1749_v44 }
 0x20f   : > { %v776_v13 = vadd.f32 %v2328_v60, %v775_v12  ;;  %1596 = vmatprep.mubr.f32.mxu0 %v836_v8 }
 0x210   : > { %1597 = vmatmul.mubr.f32.gmra.mrb[18].mxu0 %v837_v10  ;;  %v839_v3 = vmax.f32 %v781_v11, 0.0 }
 0x211   : > { %v838_v14 = vmax.f32 %v776_v13, 0.0  ;;  %v1548_v15 = vpop.f32.mrb[6].mxu1  ;;  %1752 = vmatpush3.bf16.msra.mxu0 %v1749_v44 }
 0x212   : > { %v791_v16 = vadd.f32 %v1548_v15, %v2328_v60  ;;  %v785_v17 = vpop.f32.mrb[7].mxu1  ;;  %1754 = vmatprep.subr.bf16.mxu0 %v1753_v47 }
 0x213   : > { %v786_v18 = vadd.f32 %v2328_v60, %v785_v17  ;;  %1599 = vmatprep.mubr.f32.mxu0 %v838_v14 }
 0x214   : > { %1600 = vmatmul.mubr.f32.gmra.mrb[20].mxu0 %v839_v3  ;;  %v841_v20 = vmax.f32 %v791_v16, 0.0 }
 0x215   : > { %v840_v19 = vmax.f32 %v786_v18, 0.0  ;;  %1756 = vmatpush3.bf16.msra.mxu0 %v1753_v47  ;;  %v1773_v47 = vpack.c.bf16 %v1049_v46, %v1048_v45 }
 0x216   : > { %v1551_v21 = vpop.f32.mrb[8].mxu1  ;;  %1758 = vmatprep.subr.bf16.mxu0 %v1757_v50 }
 0x217   : > { %v801_v22 = vadd.f32 %v1551_v21, %v2328_v60  ;;  %v795_v23 = vpop.f32.mrb[9].mxu1  ;;  %1602 = vmatprep.mubr.f32.mxu0 %v840_v19  ;;  %1784 = vmatprep.subr.bf16.mxu1 %v1773_v47 }
 0x218   : > { %v796_v24 = vadd.f32 %v2328_v60, %v795_v23  ;;  %1603 = vmatmul.mubr.f32.gmra.mrb[22].mxu0 %v841_v20  ;;  %1792 = vmatpush3.bf16.msra.mxu1 %v1773_v47 }
 0x219   : > { %1760 = vmatpush3.bf16.msra.mxu0 %v1757_v50  ;;  %v843_v27 = vmax.f32 %v801_v22, 0.0 }
 0x21a   : > { %v842_v25 = vmax.f32 %v796_v24, 0.0  ;;  %v1554_v26 = vpop.f32.mrb[10].mxu1  ;;  %1762 = vmatprep.subr.bf16.mxu0 %v2313_v53 }
 0x21b   : > { %v811_v28 = vadd.f32 %v1554_v26, %v2328_v60  ;;  %v805_v29 = vpop.f32.mrb[11].mxu1 }
 0x21c   : > { %v806_v30 = vadd.f32 %v2328_v60, %v805_v29  ;;  %1605 = vmatprep.mubr.f32.mxu0 %v842_v25 }
 0x21d   : > { %1606 = vmatmul.mubr.f32.gmra.mrb[24].mxu0 %v843_v27  ;;  %v845_v33 = vmax.f32 %v811_v28, 0.0 }
 0x21e   : > { %v844_v31 = vmax.f32 %v806_v30, 0.0  ;;  %v1557_v32 = vpop.f32.mrb[12].mxu1  ;;  %1764 = vmatpush3.bf16.msra.mxu0 %v2313_v53 }
 0x21f   : > { %v821_v34 = vadd.f32 %v1557_v32, %v2328_v60  ;;  %v815_v35 = vpop.f32.mrb[13].mxu1  ;;  %1766 = vmatprep.subr.bf16.mxu0 %v2316_v56 }
 0x220   : > { %v816_v36 = vadd.f32 %v2328_v60, %v815_v35  ;;  %1608 = vmatprep.mubr.f32.mxu0 %v844_v31 }
 0x221   : > { %1609 = vmatmul.mubr.f32.gmra.mrb[26].mxu0 %v845_v33  ;;  %v847_v39 = vmax.f32 %v821_v34, 0.0  ;;  %v1350_v33 = vld [vmem:[%s2439_s8] ss:$0 sm:$0xff] }
 0x222   : > { %v846_v37 = vmax.f32 %v816_v36, 0.0  ;;  %v1560_v38 = vpop.f32.mrb[14].mxu1  ;;  %1768 = vmatpush3.bf16.msra.mxu0 %v2316_v56 }
 0x223   : > { %v831_v40 = vadd.f32 %v1560_v38, %v2328_v60  ;;  %v825_v41 = vpop.f32.mrb[15].mxu1  ;;  %1770 = vmatprep.subr.bf16.mxu0 %v2320_v59 }
 0x224   : > { %v826_v42 = vadd.f32 %v2328_v60, %v825_v41  ;;  %1611 = vmatprep.mubr.f32.mxu0 %v846_v37 }
 0x225   : > { %1612 = vmatmul.mubr.f32.gmra.mrb[28].mxu0 %v847_v39  ;;  %v849_v44 = vmax.f32 %v831_v40, 0.0 }
 0x226   : > { %v848_v43 = vmax.f32 %v826_v42, 0.0  ;;  %1772 = vmatpush3.bf16.msra.mxu0 %v2320_v59 }
 0x227   : > { %1774 = vmatprep.subr.bf16.mxu0 %v1773_v47 }
 0x228   : > { %1614 = vmatprep.mubr.f32.mxu0 %v848_v43 }
 0x229   : > { %1615 = vmatmul.mubr.f32.gmra.mrb[30].mxu0 %v849_v44 }
 0x22a   : > { %1776 = vmatpush3.bf16.msra.mxu0 %v1773_v47 }
 0x2df   : > { %v1595_v49 = vpop.f32.mrb[16].mxu0 }
 0x2e0   : > { %v945_v50 = vadd.f32 %v1595_v49, %v1349_v48  ;;  %v939_v51 = vpop.f32.mrb[17].mxu0 }
 0x2e1   : > { %v940_v52 = vadd.f32 %v1349_v48, %v939_v51 }
 0x2e2   : > { %v1019_v55 = vmax.f32 %v945_v50, 0.0 }
 0x2e3   : > { %v1018_v53 = vmax.f32 %v940_v52, 0.0  ;;  %v1598_v54 = vpop.f32.mrb[18].mxu0 }
 0x2e4   : > { %v955_v56 = vadd.f32 %v1598_v54, %v1349_v48  ;;  %v949_v57 = vpop.f32.mrb[19].mxu0 }
 0x2e5   : > { %v950_v58 = vadd.f32 %v1349_v48, %v949_v57  ;;  %1649 = vmatprep.mubr.f32.mxu0 %v1018_v53 }
 0x2e6   : > { %1650 = vmatmul.mubr.f32.vlgmr.msra.gmra.mrb[32].mxu0 %v1019_v55  ;;  %v1021_v61 = vmax.f32 %v955_v56, 0.0 }
 0x2e7   : > { %v1020_v59 = vmax.f32 %v950_v58, 0.0  ;;  %v1601_v60 = vpop.f32.mrb[20].mxu0 }
 0x2e8   : > { %v965_v62 = vadd.f32 %v1601_v60, %v1349_v48  ;;  %v959_v63 = vpop.f32.mrb[21].mxu0 }
 0x2e9   : > { %v960_v0 = vadd.f32 %v1349_v48, %v959_v63  ;;  %1652 = vmatprep.mubr.f32.mxu0 %v1020_v59 }
 0x2ea   : > { %1653 = vmatmul.mubr.f32.gmra.mrb[34].mxu0 %v1021_v61  ;;  %v1023_v4 = vmax.f32 %v965_v62, 0.0 }
 0x2eb   : > { %v1022_v1 = vmax.f32 %v960_v0, 0.0  ;;  %v1604_v2 = vpop.f32.mrb[22].mxu0 }
 0x2ec   : > { %v975_v5 = vadd.f32 %v1604_v2, %v1349_v48  ;;  %v969_v6 = vpop.f32.mrb[23].mxu0 }
 0x2ed   : > { %v970_v7 = vadd.f32 %v1349_v48, %v969_v6  ;;  %1655 = vmatprep.mubr.f32.mxu0 %v1022_v1 }
 0x2ee   : > { %1656 = vmatmul.mubr.f32.gmra.mrb[36].mxu0 %v1023_v4  ;;  %v1025_v9 = vmax.f32 %v975_v5, 0.0 }
 0x2ef   : > { %v1024_v8 = vmax.f32 %v970_v7, 0.0 }
 0x2f0   : > { %v1607_v10 = vpop.f32.mrb[24].mxu0 }
 0x2f1   : > { %v985_v11 = vadd.f32 %v1607_v10, %v1349_v48  ;;  %v979_v12 = vpop.f32.mrb[25].mxu0  ;;  %1658 = vmatprep.mubr.f32.mxu1 %v1024_v8 }
 0x2f2   : > { %v980_v13 = vadd.f32 %v1349_v48, %v979_v12  ;;  %1659 = vmatmul.mubr.f32.vlgmr.msra.gmra.mrb[16].mxu1 %v1025_v9 }
 0x2f3   : > { %v1027_v3 = vmax.f32 %v985_v11, 0.0 }
 0x2f4   : > { %v1026_v14 = vmax.f32 %v980_v13, 0.0  ;;  %v1610_v15 = vpop.f32.mrb[26].mxu0 }
 0x2f5   : > { %v995_v16 = vadd.f32 %v1610_v15, %v1349_v48  ;;  %v989_v17 = vpop.f32.mrb[27].mxu0 }
 0x2f6   : > { %v990_v18 = vadd.f32 %v1349_v48, %v989_v17  ;;  %1661 = vmatprep.mubr.f32.mxu1 %v1026_v14 }
 0x2f7   : > { %1662 = vmatmul.mubr.f32.gmra.mrb[18].mxu1 %v1027_v3  ;;  %v1029_v21 = vmax.f32 %v995_v16, 0.0 }
 0x2f8   : > { %v1028_v19 = vmax.f32 %v990_v18, 0.0  ;;  %v1613_v20 = vpop.f32.mrb[28].mxu0 }
 0x2f9   : > { %v1005_v22 = vadd.f32 %v1613_v20, %v1349_v48  ;;  %v999_v23 = vpop.f32.mrb[29].mxu0 }
 0x2fa   : > { %v1000_v24 = vadd.f32 %v1349_v48, %v999_v23  ;;  %1664 = vmatprep.mubr.f32.mxu1 %v1028_v19 }
 0x2fb   : > { %1665 = vmatmul.mubr.f32.gmra.mrb[20].mxu1 %v1029_v21  ;;  %v1031_v27 = vmax.f32 %v1005_v22, 0.0 }
 0x2fc   : > { %v1030_v25 = vmax.f32 %v1000_v24, 0.0  ;;  %v1616_v26 = vpop.f32.mrb[30].mxu0 }
 0x2fd   : > { %v1015_v28 = vadd.f32 %v1616_v26, %v1349_v48  ;;  %v1009_v29 = vpop.f32.mrb[31].mxu0 }
 0x2fe   : > { %v1010_v30 = vadd.f32 %v1349_v48, %v1009_v29  ;;  %1667 = vmatprep.mubr.f32.mxu1 %v1030_v25 }
 0x2ff   : > { %1668 = vmatmul.mubr.f32.gmra.mrb[22].mxu1 %v1031_v27  ;;  %v1033_v32 = vmax.f32 %v1015_v28, 0.0 }
 0x300   : > { %v1032_v31 = vmax.f32 %v1010_v30, 0.0 }
 0x302   : > { %1670 = vmatprep.mubr.f32.mxu1 %v1032_v31 }
 0x303   : > { %1671 = vmatmul.mubr.f32.gmra.mrb[24].mxu1 %v1033_v32 }
 0x3b9   : > { %v1651_v34 = vpop.f32.mrb[32].mxu0 }
 0x3ba   : > { %v1129_v35 = vadd.f32 %v1651_v34, %v1350_v33  ;;  %v1123_v36 = vpop.f32.mrb[33].mxu0 }
 0x3bb   : > { %v1124_v37 = vadd.f32 %v1350_v33, %v1123_v36 }
 0x3bc   : > { %1203 = vst [vmem:[%s2361_s24 + $0x8] sm:$0xff] %v1129_v35 }
 0x3bd   : > { %1202 = vst [vmem:[%s2361_s24] sm:$0xff] %v1124_v37  ;;  %v1654_v38 = vpop.f32.mrb[34].mxu0 }
 0x3be   : > { %v1139_v39 = vadd.f32 %v1654_v38, %v1350_v33  ;;  %v1133_v40 = vpop.f32.mrb[35].mxu0 }
 0x3bf   : > { %v1134_v41 = vadd.f32 %v1350_v33, %v1133_v40 }
 0x3c0   : > { %1205 = vst [vmem:[%s2361_s24 + $0x18] sm:$0xff] %v1139_v39 }
 0x3c1   : > { %1204 = vst [vmem:[%s2361_s24 + $0x10] sm:$0xff] %v1134_v41  ;;  %v1657_v42 = vpop.f32.mrb[36].mxu0 }
 0x3c2   : > { %v1149_v43 = vadd.f32 %v1657_v42, %v1350_v33  ;;  %v1143_v44 = vpop.f32.mrb[37].mxu0 }
 0x3c3   : > { %v1144_v45 = vadd.f32 %v1350_v33, %v1143_v44 }
 0x3c4   : > { %1207 = vst [vmem:[%s2361_s24 + $0x28] sm:$0xff] %v1149_v43 }
 0x3c5   : > { %1206 = vst [vmem:[%s2361_s24 + $0x20] sm:$0xff] %v1144_v45  ;;  %v1660_v46 = vpop.f32.mrb[16].mxu1 }
 0x3c6   : > { %v1159_v47 = vadd.f32 %v1660_v46, %v1350_v33  ;;  %v1153_v48 = vpop.f32.mrb[17].mxu1 }
 0x3c7   : > { %v1154_v49 = vadd.f32 %v1350_v33, %v1153_v48 }
 0x3c8   : > { %1209 = vst [vmem:[%s2361_s24 + $0x38] sm:$0xff] %v1159_v47 }
 0x3c9   : > { %1208 = vst [vmem:[%s2361_s24 + $0x30] sm:$0xff] %v1154_v49 }
 0x3ca   : > { %v1663_v50 = vpop.f32.mrb[18].mxu1 }
 0x3cb   : > { %v1169_v51 = vadd.f32 %v1663_v50, %v1350_v33  ;;  %v1163_v52 = vpop.f32.mrb[19].mxu1 }
 0x3cc   : > { %v1164_v53 = vadd.f32 %v1350_v33, %v1163_v52 }
 0x3cd   : > { %1211 = vst [vmem:[%s2361_s24 + $0x48] sm:$0xff] %v1169_v51 }
 0x3ce   : > { %1210 = vst [vmem:[%s2361_s24 + $0x40] sm:$0xff] %v1164_v53  ;;  %v1666_v54 = vpop.f32.mrb[20].mxu1 }
 0x3cf   : > { %v1179_v55 = vadd.f32 %v1666_v54, %v1350_v33  ;;  %v1173_v56 = vpop.f32.mrb[21].mxu1 }
 0x3d0   : > { %v1174_v57 = vadd.f32 %v1350_v33, %v1173_v56 }
 0x3d1   : > { %1213 = vst [vmem:[%s2361_s24 + $0x58] sm:$0xff] %v1179_v55 }
 0x3d2   : > { %1212 = vst [vmem:[%s2361_s24 + $0x50] sm:$0xff] %v1174_v57  ;;  %v1669_v58 = vpop.f32.mrb[22].mxu1 }
 0x3d3   : > { %v1189_v59 = vadd.f32 %v1669_v58, %v1350_v33  ;;  %v1183_v60 = vpop.f32.mrb[23].mxu1 }
 0x3d4   : > { %v1184_v61 = vadd.f32 %v1350_v33, %v1183_v60 }
 0x3d5   : > { %1215 = vst [vmem:[%s2361_s24 + $0x68] sm:$0xff] %v1189_v59 }
 0x3d6   : > { %1214 = vst [vmem:[%s2361_s24 + $0x60] sm:$0xff] %v1184_v61  ;;  %v1672_v62 = vpop.f32.mrb[24].mxu1 }
 0x3d7   : > { %v1199_v63 = vadd.f32 %v1672_v62, %v1350_v33  ;;  %v1193_v0 = vpop.f32.mrb[25].mxu1 }
 0x3d8   : > { %v1194_v1 = vadd.f32 %v1350_v33, %v1193_v0 }
 0x3d9   : > { %1217 = vst [vmem:[%s2361_s24 + $0x78] sm:$0xff] %v1199_v63 }
 0x3da   : > { %1216 = vst [vmem:[%s2361_s24 + $0x70] sm:$0xff] %v1194_v1 }
 0x3db   : > { %1952 = shalt.err (!%p1949_p7)
}
 0x3dc   : > { %s1953_s27 = scalar_lea.hbm %s2382_s25, 2048  ;;  %s1957_s21 = scalar_lea.hbm %s2440_s9, 4096 }
 0x3dd   : > { %p1954_p8 = scmp.ne.s32.totalorder %s2382_s25, %s1953_s27  ;;  %p1958_p1 = scmp.lt.u32.totalorder %s2382_s25, %s2440_s9 }
 0x3de   : > { %p1959_p0 = scmp.lt.u32.totalorder %s1957_s21, %s1953_s27  ;;  %p1961_p6 = scmp.lt.u32.totalorder %s1953_s27, %s2382_s25 }
 0x3df   : > { %p1955_p11 = pnand %p1954_p8, %p2451_p9 }
 0x3e0   : > { %p1960_p5 = por %p1959_p0, %p1958_p1 }
 0x3e1   : > { %p1956_p13 = pneg %p1955_p11 }
 0x3e2   : > { %p1962_p10 = por %p1961_p6, %p1960_p5 }
 0x3e4   : > { %p1963_p12 = pnand %p1962_p10, %p1956_p13 }
 0x3e6   : > { %1966 = shalt.err (!%p1963_p12)
}
 0x3e7   : > { %s2011_s26 = smov 128   ;;  %s2012_s28 = smov 8  }
 0x3e8   : > { %1797 = dma.vmem_to_hbm [thread:$0]  (%p2451_p9), %s2384_s23, 2048, %s2382_s25, %s2390_s13, %s2011_s26, %s2011_s26, %s2012_s28  }
 0x3e9 PF: > { %p1809_p2 = scmp.ge.s32.totalorder %s2005_s12, 2  ;;  %s1247_s29 = sand.u32 1, %s1993_s30  }
 0x3ea   : > { %p2452_p3 = scmp.ne.s32.totalorder %s2445_s20, 0  ;;  %s1248_s16 = scalar_lea.sflag [#allocation4], %s1247_s29 }
 0x3ec   : > { %p1804_p4 = pnand %p1809_p2, %p2452_p3 }
 0x3ee   : > { %1988 = dma.done.wait (!%p1804_p4), %s1248_s16, 2048  }
 0x3ef   : > { %1990 = vsyncadd (!%p1804_p4), %s1248_s16, 4294965248  ;;  %p20_p7 = scmp.ge.s32.totalorder %s2088_s15, 4   ;;  %s2453_s30 = smov %s1997_s10 }
 0x3f0   : > { %s2454_s10 = smov %s2001_s11  ;;  %s2455_s11 = smov %s2099_s18 }
 0x3f1   : > { %s2456_s12 = smov %s2088_s15  ;;  %22 = sbr.rel (!%p20_p7) target bundleno = 4 (0x4), region = 96 }
 0x3f8   :  { %1253 = vsyncpa [#allocation3], 1 }
 0x3f9   :  { %1255 = vsyncpa [#allocation3 + $0x1], 1 }
 0x3fa   :  { %1256 = vsyncpa [#allocation4], 1 }
 0x3fb   :  { %1258 = vsyncpa [#allocation4 + $0x1], 1 }

</bundles_post_ra>
